<compile_context>
chip_gen: v7x
topology: tpu7x:2x2x1
jax: 0.10.0
libtpu: 0.0.40
codegen_flags: <defaults>
</compile_context>

<pallas_src>
import jax
import jax.numpy as jnp
from jax.experimental import pallas as pl
from jax.experimental.pallas import tpu as pltpu


def channel_att_kernel(x_ref, w1_ref, b1_ref, w2_ref, b2_ref, o_ref, acc_ref):
    # x_ref:  (Bn, C, HWt)  current batch-block x spatial tile
    # w1_ref: (C, Ch)       conv1 weight, BN + 1/(H*W) folded, transposed
    # b1_ref: (1, Ch)
    # w2_ref: (Ch, C)       conv2 weight, transposed
    # b2_ref: (1, C)
    # o_ref:  (Bn, C)
    # acc_ref:(Bn, C) f32   pooled-sum accumulator across the H*W grid axis
    hw = pl.program_id(1)

    @pl.when(hw == 0)
    def _():
        acc_ref[...] = jnp.zeros_like(acc_ref)

    # Partial spatial sum of this tile (mean's 1/(H*W) is folded into w1).
    acc_ref[...] += jnp.sum(x_ref[...].astype(jnp.float32), axis=-1)

    @pl.when(hw == pl.num_programs(1) - 1)
    def _():
        pooled = acc_ref[...]                                       # (Bn, C)
        # Conv2d(C, C//4, 1) + folded BatchNorm + ReLU
        h = jnp.dot(pooled, w1_ref[...],
                    preferred_element_type=jnp.float32) + b1_ref[...]
        h = jnp.maximum(h, 0.0)                                     # (Bn, Ch)
        # Conv2d(C//4, C, 1)
        z = jnp.dot(h, w2_ref[...],
                    preferred_element_type=jnp.float32) + b2_ref[...]  # (Bn, C)
        # Sigmoid
        o_ref[...] = 1.0 / (1.0 + jnp.exp(-z))


def channel_att_forward(x, params):
    """x: (N, C, H, W) float32.  Returns (N, C, 1, 1) float32."""
    N, C, H, W = x.shape
    Ch = max(C // 4, 1)
    HW = H * W

    w1, b1, gamma, beta, run_mean, run_var, w2, b2 = params
    eps = 1e-5

    # Fold eval-mode BatchNorm into conv1 (per output channel Ch), and fold the
    # 1/(H*W) of the average pool into the conv1 weight (bias is added after
    # the matmul, so only the weight needs scaling).
    bn_scale = gamma / jnp.sqrt(run_var + eps)                # (Ch,)
    w1_eff = w1 * bn_scale[:, None]                           # (Ch, C)
    b1_eff = (b1 - run_mean) * bn_scale + beta                # (Ch,)

    w1_t = jnp.transpose(w1_eff) * (1.0 / HW)                 # (C, Ch), pool fold
    w2_t = jnp.transpose(w2)                                  # (Ch, C)
    b1_2d = b1_eff.reshape(1, Ch)
    b2_2d = b2.reshape(1, C)

    # Channel-last-free layout: reshape only (no transpose / HBM copy).
    x3 = x.reshape(N, C, HW)

    # ---- VMEM-aware block sizing --------------------------------------------
    budget = 4 * 1024 * 1024            # bytes per x block (double-buffered ~8MiB)
    bytes_per_sample = C * HW * 4

    block_n = 8                         # multiple of 8 sublanes
    n_pad8 = pl.cdiv(N, 8) * 8
    while (block_n < 128 and block_n * 2 <= n_pad8
           and 2 * block_n * bytes_per_sample <= budget):
        block_n *= 2

    if block_n * bytes_per_sample <= budget:
        block_hw = HW                   # single pass over the spatial axis
    else:                               # tile H*W (reduction grid axis)
        block_hw = max(128, (budget // (block_n * C * 4)) // 128 * 128)

    n_pad = pl.cdiv(N, block_n) * block_n
    hw_pad = pl.cdiv(HW, block_hw) * block_hw
    if (n_pad, hw_pad) != (N, HW):
        # zero padding is exact for a sum-pool; padded rows are sliced off below
        x3 = jnp.pad(x3, ((0, n_pad - N), (0, 0), (0, hw_pad - HW)))

    grid = (n_pad // block_n, hw_pad // block_hw)

    out = pl.pallas_call(
        channel_att_kernel,
        out_shape=jax.ShapeDtypeStruct((n_pad, C), jnp.float32),
        grid=grid,
        in_specs=[
            pl.BlockSpec((block_n, C, block_hw), lambda n, h: (n, 0, h)),  # x tile
            pl.BlockSpec((C, Ch), lambda n, h: (0, 0)),                    # w1 (folded)
            pl.BlockSpec((1, Ch), lambda n, h: (0, 0)),                    # b1 (folded)
            pl.BlockSpec((Ch, C), lambda n, h: (0, 0)),                    # w2
            pl.BlockSpec((1, C), lambda n, h: (0, 0)),                     # b2
        ],
        out_specs=pl.BlockSpec((block_n, C), lambda n, h: (n, 0)),
        scratch_shapes=[pltpu.VMEM((block_n, C), jnp.float32)],
        compiler_params=pltpu.CompilerParams(
            dimension_semantics=("parallel", "arbitrary"),
            vmem_limit_bytes=32 * 1024 * 1024),
    )(x3, w1_t, b1_2d, w2_t, b2_2d)

    # Match PyTorch's (N, C, 1, 1) output of fcn(x).
    return out[:N].reshape(N, C, 1, 1)


def make_params(key, C):
    """Deterministic synthetic parameters matching ChannelAtt.__init__ shapes."""
    Ch = max(C // 4, 1)
    ks = jax.random.split(key, 6)
    w1 = jax.random.normal(ks[0], (Ch, C), jnp.float32) * 0.1     # Conv2d(C, Ch, 1)
    b1 = jax.random.normal(ks[1], (Ch,), jnp.float32) * 0.1
    gamma = 1.0 + 0.1 * jax.random.normal(ks[2], (Ch,), jnp.float32)  # BN weight
    beta = 0.1 * jax.random.normal(ks[3], (Ch,), jnp.float32)         # BN bias
    run_mean = 0.05 * jax.random.normal(ks[4], (Ch,), jnp.float32)    # BN running_mean
    run_var = jnp.ones((Ch,), jnp.float32)                            # BN running_var
    w2 = jax.random.normal(ks[5], (C, Ch), jnp.float32) * 0.1     # Conv2d(Ch, C, 1)
    b2 = jnp.zeros((C,), jnp.float32)
    return (w1, b1, gamma, beta, run_mean, run_var, w2, b2)


def reference_forward(x, params):
    """Pure-JAX reference of the PyTorch forward (eval-mode BN)."""
    w1, b1, gamma, beta, run_mean, run_var, w2, b2 = params
    eps = 1e-5
    pooled = jnp.mean(x, axis=(2, 3))                         # (N, C)
    y = pooled @ w1.T + b1
    y = gamma * (y - run_mean) / jnp.sqrt(run_var + eps) + beta
    y = jnp.maximum(y, 0.0)
    y = y @ w2.T + b2
    y = jax.nn.sigmoid(y)
    return y.reshape(x.shape[0], x.shape[1], 1, 1)


if __name__ == "__main__":
    N, C, H, W = 2, 32, 16, 16          # batch, channels, spatial

    key = jax.random.PRNGKey(0)
    kx, kp = jax.random.split(key)
    x = jax.random.normal(kx, (N, C, H, W), jnp.float32)
    params = make_params(kp, C)

    out = channel_att_forward(x, params)
    out = jax.block_until_ready(out)

    ref = reference_forward(x, params)
    assert out.shape == (N, C, 1, 1)
    assert jnp.allclose(out, ref, atol=1e-5, rtol=1e-4), "mismatch vs reference"

    print("KERNEL_OK")
</pallas_src>

<mosaic_0001>
module attributes {stable_mosaic.version = 11 : i64} {
  func.func @channel_att_kernel(%arg0: i32, %arg1: i32, %arg2: memref<8x32x256xf32, #tpu.memory_space<vmem>>, %arg3: memref<32x8xf32, #tpu.memory_space<vmem>>, %arg4: memref<1x8xf32, #tpu.memory_space<vmem>>, %arg5: memref<8x32xf32, #tpu.memory_space<vmem>>, %arg6: memref<1x32xf32, #tpu.memory_space<vmem>>, %arg7: memref<8x32xf32, #tpu.memory_space<vmem>>, %arg8: memref<8x32xf32, #tpu.memory_space<vmem>>) attributes {dimension_semantics = [#tpu.dimension_semantics<parallel>, #tpu.dimension_semantics<arbitrary>], iteration_bounds = array<i64: 1, 1>, scalar_prefetch = 0 : i64, scratch_operands = 1 : i64, tpu.core_type = #tpu.core_type<tc>, window_params = [{transform_indices = @transform_0, window_bounds = array<i64: 8, 32, 256>}, {pipeline_mode = #tpu.pipeline_mode<synchronous>, transform_indices = @transform_1, window_bounds = array<i64: 32, 8>}, {pipeline_mode = #tpu.pipeline_mode<synchronous>, transform_indices = @transform_2, window_bounds = array<i64: 1, 8>}, {pipeline_mode = #tpu.pipeline_mode<synchronous>, transform_indices = @transform_3, window_bounds = array<i64: 8, 32>}, {pipeline_mode = #tpu.pipeline_mode<synchronous>, transform_indices = @transform_4, window_bounds = array<i64: 1, 32>}, {transform_indices = @transform_5, window_bounds = array<i64: 8, 32>}]} {
    %c0_i32 = arith.constant 0 : i32
    %0 = arith.cmpi eq, %arg1, %c0_i32 : i32
    %1 = arith.extui %0 : i1 to i32
    %c0_i32_0 = arith.constant 0 : i32
    %2 = arith.cmpi ne, %1, %c0_i32_0 : i32
    scf.if %2 {
      %cst_9 = arith.constant 0.000000e+00 : f32
      %11 = vector.broadcast %cst_9 : f32 to vector<8x32xf32>
      %c0_10 = arith.constant 0 : index
      %c0_11 = arith.constant 0 : index
      %12 = vector.load %arg8[%c0_10, %c0_11] : memref<8x32xf32, #tpu.memory_space<vmem>>, vector<8x32xf32>
      tpu.vector_store %arg8[%c0_10, %c0_11], %11 {strides = array<i32>} : memref<8x32xf32, #tpu.memory_space<vmem>>, vector<8x32xf32>,
    } else {
    }
    %c0 = arith.constant 0 : index
    %c0_1 = arith.constant 0 : index
    %3 = vector.load %arg8[%c0, %c0_1] : memref<8x32xf32, #tpu.memory_space<vmem>>, vector<8x32xf32>
    %c0_2 = arith.constant 0 : index
    %c0_3 = arith.constant 0 : index
    %c0_4 = arith.constant 0 : index
    %4 = vector.load %arg2[%c0_2, %c0_3, %c0_4] : memref<8x32x256xf32, #tpu.memory_space<vmem>>, vector<8x32x256xf32>
    %cst = arith.constant dense<0.000000e+00> : vector<8x32xf32>
    %5 = vector.multi_reduction <add>, %4, %cst [2] : vector<8x32x256xf32> to vector<8x32xf32>
    %6 = arith.addf %3, %5 : vector<8x32xf32>
    %c0_5 = arith.constant 0 : index
    %c0_6 = arith.constant 0 : index
    %7 = vector.load %arg8[%c0_5, %c0_6] : memref<8x32xf32, #tpu.memory_space<vmem>>, vector<8x32xf32>
    tpu.vector_store %arg8[%c0_5, %c0_6], %6 {strides = array<i32>} : memref<8x32xf32, #tpu.memory_space<vmem>>, vector<8x32xf32>,
    %c0_i32_7 = arith.constant 0 : i32
    %8 = arith.cmpi eq, %arg1, %c0_i32_7 : i32
    %9 = arith.extui %8 : i1 to i32
    %c0_i32_8 = arith.constant 0 : i32
    %10 = arith.cmpi ne, %9, %c0_i32_8 : i32
    scf.if %10 {
      %c0_9 = arith.constant 0 : index
      %c0_10 = arith.constant 0 : index
      %11 = vector.load %arg8[%c0_9, %c0_10] : memref<8x32xf32, #tpu.memory_space<vmem>>, vector<8x32xf32>
      %c0_11 = arith.constant 0 : index
      %c0_12 = arith.constant 0 : index
      %12 = vector.load %arg3[%c0_11, %c0_12] : memref<32x8xf32, #tpu.memory_space<vmem>>, vector<32x8xf32>
      %cst_13 = arith.constant dense<0.000000e+00> : vector<8x8xf32>
      %13 = tpu.matmul %11, %12, %cst_13 {dimension_numbers = #tpu.dot_dimension_numbers<[1], [0], [0], [1], [0, 0, 1, 1], [], []>} : vector<8x32xf32>, vector<32x8xf32>, vector<8x8xf32> -> vector<8x8xf32>
      %c0_14 = arith.constant 0 : index
      %c0_15 = arith.constant 0 : index
      %14 = vector.load %arg4[%c0_14, %c0_15] : memref<1x8xf32, #tpu.memory_space<vmem>>, vector<1x8xf32>
      %15 = vector.broadcast %14 : vector<1x8xf32> to vector<8x8xf32>
      %16 = arith.addf %13, %15 : vector<8x8xf32>
      %cst_16 = arith.constant 0.000000e+00 : f32
      %17 = vector.broadcast %cst_16 : f32 to vector<8x8xf32>
      %18 = arith.maximumf %16, %17 : vector<8x8xf32>
      %c0_17 = arith.constant 0 : index
      %c0_18 = arith.constant 0 : index
      %19 = vector.load %arg5[%c0_17, %c0_18] : memref<8x32xf32, #tpu.memory_space<vmem>>, vector<8x32xf32>
      %cst_19 = arith.constant dense<0.000000e+00> : vector<8x32xf32>
      %20 = tpu.matmul %18, %19, %cst_19 {dimension_numbers = #tpu.dot_dimension_numbers<[1], [0], [0], [1], [0, 0, 1, 1], [], []>} : vector<8x8xf32>, vector<8x32xf32>, vector<8x32xf32> -> vector<8x32xf32>
      %c0_20 = arith.constant 0 : index
      %c0_21 = arith.constant 0 : index
      %21 = vector.load %arg6[%c0_20, %c0_21] : memref<1x32xf32, #tpu.memory_space<vmem>>, vector<1x32xf32>
      %22 = vector.broadcast %21 : vector<1x32xf32> to vector<8x32xf32>
      %23 = arith.addf %20, %22 : vector<8x32xf32>
      %cst_22 = arith.constant 0.000000e+00 : f32
      %24 = vector.broadcast %cst_22 : f32 to vector<8x32xf32>
      %25 = arith.subf %24, %23 : vector<8x32xf32>
      %26 = math.exp %25 : vector<8x32xf32>
      %cst_23 = arith.constant 1.000000e+00 : f32
      %27 = vector.broadcast %cst_23 : f32 to vector<8x32xf32>
      %28 = arith.addf %27, %26 : vector<8x32xf32>
      %cst_24 = arith.constant 1.000000e+00 : f32
      %29 = vector.broadcast %cst_24 : f32 to vector<8x32xf32>
      %30 = arith.divf %29, %28 : vector<8x32xf32>
      %c0_25 = arith.constant 0 : index
      %c0_26 = arith.constant 0 : index
      %31 = vector.load %arg7[%c0_25, %c0_26] : memref<8x32xf32, #tpu.memory_space<vmem>>, vector<8x32xf32>
      tpu.vector_store %arg7[%c0_25, %c0_26], %30 {strides = array<i32>} : memref<8x32xf32, #tpu.memory_space<vmem>>, vector<8x32xf32>,
    } else {
    }
    return
  }
  func.func @transform_0(%arg0: i32, %arg1: i32) -> (i32, i32, i32) {
    %c0_i32 = arith.constant 0 : i32
    %c0_i32_0 = arith.constant 0 : i32
    return %arg0, %c0_i32, %arg1 : i32, i32, i32
  }
  func.func @transform_1(%arg0: i32, %arg1: i32) -> (i32, i32) {
    %c0_i32 = arith.constant 0 : i32
    %c0_i32_0 = arith.constant 0 : i32
    %c0_i32_1 = arith.constant 0 : i32
    return %c0_i32, %c0_i32_0 : i32, i32
  }
  func.func @transform_2(%arg0: i32, %arg1: i32) -> (i32, i32) {
    %c0_i32 = arith.constant 0 : i32
    %c0_i32_0 = arith.constant 0 : i32
    %c0_i32_1 = arith.constant 0 : i32
    return %c0_i32, %c0_i32_0 : i32, i32
  }
  func.func @transform_3(%arg0: i32, %arg1: i32) -> (i32, i32) {
    %c0_i32 = arith.constant 0 : i32
    %c0_i32_0 = arith.constant 0 : i32
    %c0_i32_1 = arith.constant 0 : i32
    return %c0_i32, %c0_i32_0 : i32, i32
  }
  func.func @transform_4(%arg0: i32, %arg1: i32) -> (i32, i32) {
    %c0_i32 = arith.constant 0 : i32
    %c0_i32_0 = arith.constant 0 : i32
    %c0_i32_1 = arith.constant 0 : i32
    return %c0_i32, %c0_i32_0 : i32, i32
  }
  func.func @transform_5(%arg0: i32, %arg1: i32) -> (i32, i32) {
    %c0_i32 = arith.constant 0 : i32
    %c0_i32_0 = arith.constant 0 : i32
    return %arg0, %c0_i32 : i32, i32
  }
}

</mosaic_0001>

<bundles_post_ra>
// kernel: tpu_custom_call.1
= control target key start
LH: loop header
LB: loop body
LE: loop exit
PB: predicated region body
PF: predicated region fallthrough
CT: control target
= control target key end

     0   :  { %10 = vsyncpa [#allocation4], 0  ;;  %s884_s0 = inlined_call_operand.hbm [shape: f32[8,32,256], index: 0, kind: input, shape index: {}]   ;;  %s885_s1 = inlined_call_operand.vmem [shape: f32[32,8], index: 1, kind: input, shape index: {}]   ;;  %s886_s2 = inlined_call_operand.vmem [shape: f32[1,8], index: 2, kind: input, shape index: {}]   ;;  %s887_s3 = inlined_call_operand.vmem [shape: f32[8,32], index: 3, kind: input, shape index: {}]   ;;  %s888_s4 = inlined_call_operand.vmem [shape: f32[1,32], index: 4, kind: input, shape index: {}]   ;;  %s889_s5 = inlined_call_operand.hbm [shape: f32[8,32], index: 5, kind: output, shape index: {}]  }
   0x1   :  { %11 = vsyncpa [#allocation5], 0  ;;  %s697_s18 = smov [#allocation3]   ;;  %s649_s22 = scalar_lea.hbm %s884_s0, 8192 }
   0x2   :  { %s17_s19 = sshll.u32 %s697_s18, 4  ;;  %p650_p0 = scmp.ne.s32.totalorder %s884_s0, %s649_s22  ;;  %s18_s19 = int_to_ptr.vmem [resolvable:$true] %s17_s19 }
   0x3   :  { %p653_p1 = scmp.lt.u32.totalorder %s649_s22, %s884_s0 }
   0x5   :  { %p655_p2 = pnand %p653_p1, %p650_p0 }
   0x7   :  { %658 = shalt.err (!%p655_p2)
}
   0x8   :  { %s659_s27 = scalar_lea.vmem %s18_s19, 8192  ;;  %p664_p4 = scmp.lt.s32.totalorder %s18_s19, %s18_s19 }
   0x9   :  { %p660_p3 = scmp.ne.s32.totalorder %s18_s19, %s659_s27  ;;  %p665_p5 = scmp.lt.s32.totalorder %s659_s27, %s659_s27 }
   0xb   :  { %p666_p6 = por %p665_p5, %p664_p4 }
   0xd   :  { %p667_p7 = pnand %p666_p6, %p660_p3 }
   0xf   :  { %670 = shalt.err (!%p667_p7)
}
  0x10   :  { %s698_s28 = smov 256   ;;  %s699_s29 = smov 16  }
  0x11   :  { %23 = dma.hbm_to_vmem [thread:$0]  %s884_s0, 8192, %s18_s19, [#allocation4], %s698_s28, %s698_s28, %s699_s29  }
  0x12   :  { %693 = dma.done.wait [#allocation4], 8192  }
  0x13   :  { %694 = vsyncadd [#allocation4], 4294959104  ;;  %v50_v0 = vld [vmem:[#allocation3 + $0x40] sm:$0xff]  ;;  %v51_v1 = vld [vmem:[#allocation3 + $0x48] sm:$0xff]  ;;  %vm39_vm0 = vcmask 261120   ;;  %vm702_vm1 = vmmov 0  }
  0x14   :  { %v42_v2 = vld [vmem:[#allocation3] sm:$0xff]  ;;  %v118_v3 = vadd.f32 %v51_v1, %v50_v0  ;;  %v43_v4 = vld [vmem:[#allocation3 + $0x8] sm:$0xff]  ;;  %v52_v5 = vld [vmem:[#allocation3 + $0x50] sm:$0xff]  ;;  %vm245_vm2 = vcmask 130112   ;;  %vm252_vm3 = vcmask 195712   ;;  %vm259_vm4 = vcmask 261312  }
  0x15   :  { %v53_v6 = vld [vmem:[#allocation3 + $0x58] sm:$0xff]  ;;  %v106_v7 = vadd.f32 %v43_v4, %v42_v2  ;;  %v44_v8 = vld [vmem:[#allocation3 + $0x10] sm:$0xff]  ;;  %v54_v12 = vld [vmem:[#allocation3 + $0x60] sm:$0xff]  ;;  %vm394_vm5 = vcmask 1041409   ;;  %vm396_vm6 = vcmask 1042434   ;;  %vm398_vm7 = vcmask 1043459  }
  0x16   :  { %v45_v9 = vld [vmem:[#allocation3 + $0x18] sm:$0xff]  ;;  %119 = vadd.xlane.f32.xlu1 %v118_v3  ;;  %v121_v10 = vadd.f32 %v53_v6, %v52_v5  ;;  %v55_v13 = vld [vmem:[#allocation3 + $0x68] sm:$0xff]  ;;  %v46_v14 = vld [vmem:[#allocation3 + $0x20] sm:$0xff]  ;;  %vm400_vm8 = vcmask 1044484   ;;  %vm402_vm9 = vcmask 1045509   ;;  %vm404_vm10 = vcmask 1046534  }
  0x17   :  { %107 = vadd.xlane.f32.xlu0 %v106_v7  ;;  %v109_v11 = vadd.f32 %v45_v9, %v44_v8  ;;  %v47_v15 = vld [vmem:[#allocation3 + $0x28] sm:$0xff]  ;;  %v124_v16 = vadd.f32 %v55_v13, %v54_v12  ;;  %v60_v18 = vld [vmem:[#allocation3 + $0x90] sm:$0xff]  ;;  %v61_v19 = vld [vmem:[#allocation3 + $0x98] sm:$0xff]  ;;  %vm406_vm11 = vcmask 1047559   ;;  %vm509_vm12 = vcmask 64512  }
  0x18   :  { %v112_v17 = vadd.f32 %v47_v15, %v46_v14  ;;  %v58_v20 = vld [vmem:[#allocation3 + $0x80] sm:$0xff]  ;;  %v59_v21 = vld [vmem:[#allocation3 + $0x88] sm:$0xff]  ;;  %v133_v22 = vadd.f32 %v61_v19, %v60_v18  ;;  %v56_v24 = vld [vmem:[#allocation3 + $0x70] sm:$0xff] }
  0x19   :  { %v130_v23 = vadd.f32 %v59_v21, %v58_v20  ;;  %v57_v25 = vld [vmem:[#allocation3 + $0x78] sm:$0xff]  ;;  %v48_v26 = vld [vmem:[#allocation3 + $0x30] sm:$0xff]  ;;  %v66_v30 = vld [vmem:[#allocation3 + $0xc0] sm:$0xff] }
  0x1a   :  { %122 = vadd.xlane.f32.xlu1 %v121_v10  ;;  %v49_v27 = vld [vmem:[#allocation3 + $0x38] sm:$0xff]  ;;  %v127_v28 = vadd.f32 %v57_v25, %v56_v24  ;;  %v67_v31 = vld [vmem:[#allocation3 + $0xc8] sm:$0xff]  ;;  %v62_v32 = vld [vmem:[#allocation3 + $0xa0] sm:$0xff] }
  0x1b   :  { %110 = vadd.xlane.f32.xlu0 %v109_v11  ;;  %v115_v29 = vadd.f32 %v49_v27, %v48_v26  ;;  %v63_v33 = vld [vmem:[#allocation3 + $0xa8] sm:$0xff]  ;;  %v142_v34 = vadd.f32 %v67_v31, %v66_v30  ;;  %v64_v36 = vld [vmem:[#allocation3 + $0xb0] sm:$0xff]  ;;  %v65_v37 = vld [vmem:[#allocation3 + $0xb8] sm:$0xff] }
  0x1c   :  { %v136_v35 = vadd.f32 %v63_v33, %v62_v32  ;;  %v68_v38 = vld [vmem:[#allocation3 + $0xd0] sm:$0xff]  ;;  %v69_v39 = vld [vmem:[#allocation3 + $0xd8] sm:$0xff]  ;;  %v139_v40 = vadd.f32 %v65_v37, %v64_v36  ;;  %v74_v42 = vld [vmem:[#allocation3 + $0x100] sm:$0xff]  ;;  %v700_v32 = vmov 0.0   ;;  %v701_v36 = vmov 0.0|0.0  }
  0x1d   :  { %v145_v41 = vadd.f32 %v69_v39, %v68_v38  ;;  %v75_v43 = vld [vmem:[#allocation3 + $0x108] sm:$0xff]  ;;  %v70_v44 = vld [vmem:[#allocation3 + $0xe0] sm:$0xff]  ;;  %v72_v48 = vld [vmem:[#allocation3 + $0xf0] sm:$0xff]  ;;  %40 = vst.msk [vmem:[#allocation2] sm:$0xff] %vm39_vm0, %v700_v32  ;;  %627 = vmatprep.subr.mxu1 %v700_v32  ;;  %632 = vmatprep.subr.bf16.mxu0 %v701_v36 }
  0x1e   :  { %125 = vadd.xlane.f32.xlu1 %v124_v16  ;;  %v71_v45 = vld [vmem:[#allocation3 + $0xe8] sm:$0xff]  ;;  %v154_v46 = vadd.f32 %v75_v43, %v74_v42  ;;  %v73_v49 = vld [vmem:[#allocation3 + $0xf8] sm:$0xff]  ;;  %v76_v50 = vld [vmem:[#allocation3 + $0x110] sm:$0xff]  ;;  %624 = vmatprep.mubr.msk.f32.mxu0 %vm702_vm1, %v700_v32 }
  0x1f   :  { %113 = vadd.xlane.f32.xlu0 %v112_v17  ;;  %v148_v47 = vadd.f32 %v71_v45, %v70_v44  ;;  %v77_v51 = vld [vmem:[#allocation3 + $0x118] sm:$0xff]  ;;  %v151_v52 = vadd.f32 %v73_v49, %v72_v48  ;;  %v82_v54 = vld [vmem:[#allocation3 + $0x140] sm:$0xff]  ;;  %v83_v55 = vld [vmem:[#allocation3 + $0x148] sm:$0xff]  ;;  %629 = vmatprep.mubr.msk.f32.mxu1 %vm702_vm1, %v700_v32 }
  0x20   :  { %v157_v53 = vadd.f32 %v77_v51, %v76_v50  ;;  %v78_v56 = vld [vmem:[#allocation3 + $0x120] sm:$0xff]  ;;  %v79_v57 = vld [vmem:[#allocation3 + $0x128] sm:$0xff]  ;;  %v166_v58 = vadd.f32 %v83_v55, %v82_v54  ;;  %v80_v60 = vld [vmem:[#allocation3 + $0x130] sm:$0xff] }
  0x21   :  { %v160_v59 = vadd.f32 %v79_v57, %v78_v56  ;;  %v81_v61 = vld [vmem:[#allocation3 + $0x138] sm:$0xff]  ;;  %v84_v62 = vld [vmem:[#allocation3 + $0x150] sm:$0xff]  ;;  %v90_v2 = vld [vmem:[#allocation3 + $0x180] sm:$0xff]  ;;  %v234_v56 = vlaneseq }
  0x22   :  { %134 = vadd.xlane.f32.xlu1 %v133_v22  ;;  %v85_v63 = vld [vmem:[#allocation3 + $0x158] sm:$0xff]  ;;  %v163_v0 = vadd.f32 %v81_v61, %v80_v60  ;;  %v91_v3 = vld [vmem:[#allocation3 + $0x188] sm:$0xff]  ;;  %v86_v4 = vld [vmem:[#allocation3 + $0x160] sm:$0xff] }
  0x23   :  { %131 = vadd.xlane.f32.xlu0 %v130_v23  ;;  %v169_v1 = vadd.f32 %v85_v63, %v84_v62  ;;  %v87_v5 = vld [vmem:[#allocation3 + $0x168] sm:$0xff]  ;;  %v178_v6 = vadd.f32 %v91_v3, %v90_v2  ;;  %v88_v8 = vld [vmem:[#allocation3 + $0x170] sm:$0xff]  ;;  %v89_v9 = vld [vmem:[#allocation3 + $0x178] sm:$0xff] }
  0x24   :  { %v172_v7 = vadd.f32 %v87_v5, %v86_v4  ;;  %v92_v10 = vld [vmem:[#allocation3 + $0x190] sm:$0xff]  ;;  %v93_v11 = vld [vmem:[#allocation3 + $0x198] sm:$0xff]  ;;  %v175_v12 = vadd.f32 %v89_v9, %v88_v8  ;;  %v98_v14 = vld [vmem:[#allocation3 + $0x1c0] sm:$0xff] }
  0x25   :  { %v181_v13 = vadd.f32 %v93_v11, %v92_v10  ;;  %v99_v15 = vld [vmem:[#allocation3 + $0x1c8] sm:$0xff]  ;;  %v94_v16 = vld [vmem:[#allocation3 + $0x1a0] sm:$0xff]  ;;  %v96_v20 = vld [vmem:[#allocation3 + $0x1b0] sm:$0xff] }
  0x26   :  { %128 = vadd.xlane.f32.xlu1 %v127_v28  ;;  %v95_v17 = vld [vmem:[#allocation3 + $0x1a8] sm:$0xff]  ;;  %v190_v18 = vadd.f32 %v99_v15, %v98_v14  ;;  %v97_v21 = vld [vmem:[#allocation3 + $0x1b8] sm:$0xff]  ;;  %v100_v22 = vld [vmem:[#allocation3 + $0x1d0] sm:$0xff] }
  0x27   :  { %116 = vadd.xlane.f32.xlu0 %v115_v29  ;;  %v184_v19 = vadd.f32 %v95_v17, %v94_v16  ;;  %v101_v23 = vld [vmem:[#allocation3 + $0x1d8] sm:$0xff]  ;;  %v187_v24 = vadd.f32 %v97_v21, %v96_v20  ;;  %v104_v26 = vld [vmem:[#allocation3 + $0x1f0] sm:$0xff]  ;;  %v102_v28 = vld [vmem:[#allocation3 + $0x1e0] sm:$0xff] }
  0x28   :  { %v193_v25 = vadd.f32 %v101_v23, %v100_v22  ;;  %v105_v27 = vld [vmem:[#allocation3 + $0x1f8] sm:$0xff]  ;;  %v103_v29 = vld [vmem:[#allocation3 + $0x1e8] sm:$0xff]  ;;  %v419_v38 = vld [vmem:[%s885_s1 + $0x18] sm:$0xff] }
  0x29   :  { %v199_v30 = vadd.f32 %v105_v27, %v104_v26  ;;  %v196_v31 = vadd.f32 %v103_v29, %v102_v28  ;;  %v416_v33 = vld [vmem:[%s885_s1] sm:$0xff] }
  0x2a   :  { %143 = vadd.xlane.f32.xlu1 %v142_v34  ;;  %v417_v34 = vld [vmem:[%s885_s1 + $0x8] sm:$0xff] }
  0x2b   :  { %137 = vadd.xlane.f32.xlu0 %v136_v35  ;;  %v418_v35 = vld [vmem:[%s885_s1 + $0x10] sm:$0xff]  ;;  %v633_v37 = vpack.c.bf16 %v417_v34, %v416_v33 }
  0x2c   :  { %v636_v39 = vpack.c.bf16 %v419_v38, %v418_v35 }
  0x2d   :  { %634 = vmatpush3.bf16.msra.mxu0 %v633_v37 }
  0x2e   :  { %140 = vadd.xlane.f32.xlu1 %v139_v40  ;;  %635 = vmatprep.subr.bf16.mxu0 %v701_v36 }
  0x2f   :  { %146 = vadd.xlane.f32.xlu0 %v145_v41 }
  0x31   :  { %637 = vmatpush3.bf16.msra.mxu0 %v636_v39 }
  0x32   :  { %155 = vadd.xlane.f32.xlu1 %v154_v46 }
  0x33   :  { %149 = vadd.xlane.f32.xlu0 %v148_v47 }
  0x36   :  { %152 = vadd.xlane.f32.xlu1 %v151_v52 }
  0x37   :  { %158 = vadd.xlane.f32.xlu0 %v157_v53 }
  0x3a   :  { %167 = vadd.xlane.f32.xlu1 %v166_v58 }
  0x3b   :  { %161 = vadd.xlane.f32.xlu0 %v160_v59  ;;  %v235_v59 = vand.u32 127, %v234_v56 }
  0x3d   :  { %v240_v60 = vadd.s32 4294967288, %v235_v59  ;;  %v247_v62 = vadd.s32 4294967280, %v235_v59 }
  0x3e   :  { %164 = vadd.xlane.f32.xlu1 %v163_v0  ;;  %v237_v0 = vshrl.u32 %v234_v56, 7 }
  0x3f   :  { %170 = vadd.xlane.f32.xlu0 %v169_v1  ;;  %v254_v1 = vadd.s32 4294967272, %v235_v59 }
  0x40   :  { %v775_v2 = vsub.s32 %v240_v60, %v237_v0  ;;  %v779_v4 = vsub.s32 %v247_v62, %v237_v0 }
  0x42   :  { %179 = vadd.xlane.f32.xlu1 %v178_v6  ;;  %v783_v6 = vsub.s32 %v235_v59, %v237_v0 }
  0x43   :  { %173 = vadd.xlane.f32.xlu0 %v172_v7  ;;  %v785_v7 = vsub.s32 %v254_v1, %v237_v0 }
  0x46   :  { %176 = vadd.xlane.f32.xlu1 %v175_v12 }
  0x47   :  { %182 = vadd.xlane.f32.xlu0 %v181_v13 }
  0x4a   :  { %191 = vadd.xlane.f32.xlu1 %v190_v18 }
  0x4b   :  { %185 = vadd.xlane.f32.xlu0 %v184_v19 }
  0x4e   :  { %188 = vadd.xlane.f32.xlu1 %v187_v24 }
  0x4f   :  { %194 = vadd.xlane.f32.xlu0 %v193_v25 }
  0x52   :  { %200 = vadd.xlane.f32.xlu1 %v199_v30 }
  0x53   :  { %197 = vadd.xlane.f32.xlu0 %v196_v31 }
  0xa3   :  { %v120_v40 = vpop.xlane.xlu1 %119 }
  0xa4   :  { %v108_v41 = vpop.xlane.xlu0 %107  ;;  %v264_v14 = vrot.slane %v120_v40, %v783_v6 }
  0xa5   :  { %v239_v15 = vrot.slane %v108_v41, %v783_v6 }
  0xa7   :  { %v123_v42 = vpop.xlane.xlu1 %122 }
  0xa8   :  { %v111_v43 = vpop.xlane.xlu0 %110  ;;  %v268_v8 = vrot.slane %v123_v42, %v775_v2 }
  0xa9   :  { %v244_v9 = vrot.slane %v111_v43, %v775_v2 }
  0xaa   :  { %v269_v18 = vsel %vm245_vm2, %v268_v8, %v264_v14 }
  0xab   :  { %v126_v44 = vpop.xlane.xlu1 %125  ;;  %v246_v19 = vsel %vm245_vm2, %v244_v9, %v239_v15 }
  0xac   :  { %v114_v45 = vpop.xlane.xlu0 %113  ;;  %v273_v11 = vrot.slane %v126_v44, %v779_v4 }
  0xad   :  { %v251_v12 = vrot.slane %v114_v45, %v779_v4 }
  0xae   :  { %v274_v21 = vsel %vm252_vm3, %v273_v11, %v269_v18 }
  0xaf   :  { %v135_v46 = vpop.xlane.xlu1 %134  ;;  %v253_v22 = vsel %vm252_vm3, %v251_v12, %v246_v19 }
  0xb0   :  { %v132_v47 = vpop.xlane.xlu0 %131  ;;  %v287_v23 = vrot.slane %v135_v46, %v775_v2 }
  0xb1   :  { %v283_v24 = vrot.slane %v132_v47, %v783_v6 }
  0xb3   :  { %v129_v48 = vpop.xlane.xlu1 %128  ;;  %v288_v31 = vsel %vm245_vm2, %v287_v23, %v283_v24 }
  0xb4   :  { %v117_v49 = vpop.xlane.xlu0 %116  ;;  %v278_v16 = vrot.slane %v129_v48, %v785_v7 }
  0xb5   :  { %v258_v17 = vrot.slane %v117_v49, %v785_v7 }
  0xb6   :  { %v279_v26 = vsel %vm259_vm4, %v278_v16, %v274_v21  ;;  %v41_v16 = vld [vmem:[#allocation2] sm:$0xff] }
  0xb7   :  { %v759_v50 = vpop.xlane.xlu1 %143  ;;  %v260_v27 = vsel %vm259_vm4, %v258_v17, %v253_v22  ;;  %v605_v21 = vld [vmem:[%s886_s2] ss:$0 sm:$0xff]  ;;  %s703_s2 = smov [#allocation6]  }
  0xb8   :  { %v138_v51 = vpop.xlane.xlu0 %137  ;;  %v395_v32 = vsel %vm394_vm5, %v279_v26, %v260_v27  ;;  %v302_v35 = vrot.slane %v759_v50, %v783_v6  ;;  %v607_v26 = vld [vmem:[%s888_s4] ss:$0 sm:$0xff] }
  0xb9   :  { %v292_v28 = vrot.slane %v138_v51, %v779_v4 }
  0xbb   :  { %v141_v52 = vpop.xlane.xlu1 %140  ;;  %v293_v36 = vsel %vm252_vm3, %v292_v28, %v288_v31 }
  0xbc   :  { %v761_v53 = vpop.xlane.xlu0 %146  ;;  %v297_v29 = vrot.slane %v141_v52, %v785_v7 }
  0xbd   :  { %v306_v33 = vrot.slane %v761_v53, %v775_v2 }
  0xbe   :  { %v298_v39 = vsel %vm259_vm4, %v297_v29, %v293_v36 }
  0xbf   :  { %v763_v54 = vpop.xlane.xlu1 %155  ;;  %v307_v48 = vsel %vm245_vm2, %v306_v33, %v302_v35 }
  0xc0   :  { %v765_v55 = vpop.xlane.xlu0 %149  ;;  %v321_v43 = vrot.slane %v763_v54, %v783_v6 }
  0xc1   :  { %v311_v37 = vrot.slane %v765_v55, %v779_v4 }
  0xc3   :  { %v767_v57 = vpop.xlane.xlu1 %152  ;;  %v312_v53 = vsel %vm252_vm3, %v311_v37, %v307_v48 }
  0xc4   :  { %v769_v58 = vpop.xlane.xlu0 %158  ;;  %v316_v40 = vrot.slane %v767_v57, %v785_v7 }
  0xc5   :  { %v325_v38 = vrot.slane %v769_v58, %v775_v2 }
  0xc6   :  { %v317_v57 = vsel %vm259_vm4, %v316_v40, %v312_v53 }
  0xc7   :  { %v771_v61 = vpop.xlane.xlu1 %167  ;;  %v326_v54 = vsel %vm245_vm2, %v325_v38, %v321_v43 }
  0xc8   :  { %v773_v63 = vpop.xlane.xlu0 %161  ;;  %v340_v49 = vrot.slane %v771_v61, %v783_v6  ;;  %v397_v61 = vsel %vm396_vm6, %v298_v39, %v395_v32 }
  0xc9   :  { %v330_v41 = vrot.slane %v773_v63, %v779_v4 }
  0xcb   :  { %v777_v3 = vpop.xlane.xlu1 %164  ;;  %v331_v58 = vsel %vm252_vm3, %v330_v41, %v326_v54 }
  0xcc   :  { %v781_v5 = vpop.xlane.xlu0 %170  ;;  %v335_v44 = vrot.slane %v777_v3, %v785_v7 }
  0xcd   :  { %v344_v42 = vrot.slane %v781_v5, %v775_v2 }
  0xce   :  { %v336_v62 = vsel %vm259_vm4, %v335_v44, %v331_v58 }
  0xcf   :  { %v789_v10 = vpop.xlane.xlu1 %179  ;;  %v345_v59 = vsel %vm245_vm2, %v344_v42, %v340_v49 }
  0xd0   :  { %v174_v13 = vpop.xlane.xlu0 %173  ;;  %v359_v55 = vrot.slane %v789_v10, %v783_v6 }
  0xd1   :  { %v349_v45 = vrot.slane %v174_v13, %v779_v4 }
  0xd3   :  { %v177_v20 = vpop.xlane.xlu1 %176  ;;  %v350_v63 = vsel %vm252_vm3, %v349_v45, %v345_v59 }
  0xd4   :  { %v183_v25 = vpop.xlane.xlu0 %182  ;;  %v354_v50 = vrot.slane %v177_v20, %v785_v7 }
  0xd5   :  { %v363_v46 = vrot.slane %v183_v25, %v775_v2 }
  0xd6   :  { %v355_v3 = vsel %vm259_vm4, %v354_v50, %v350_v63 }
  0xd7   :  { %v192_v30 = vpop.xlane.xlu1 %191  ;;  %v364_v0 = vsel %vm245_vm2, %v363_v46, %v359_v55 }
  0xd8   :  { %v186_v34 = vpop.xlane.xlu0 %185  ;;  %v378_v5 = vrot.slane %v192_v30, %v783_v6 }
  0xd9   :  { %v368_v51 = vrot.slane %v186_v34, %v779_v4 }
  0xdb   :  { %v189_v47 = vpop.xlane.xlu1 %188  ;;  %v369_v8 = vsel %vm252_vm3, %v368_v51, %v364_v0 }
  0xdc   :  { %v195_v52 = vpop.xlane.xlu0 %194  ;;  %v373_v56 = vrot.slane %v189_v47, %v785_v7 }
  0xdd   :  { %v382_v60 = vrot.slane %v195_v52, %v775_v2  ;;  %v399_v2 = vsel %vm398_vm7, %v317_v57, %v397_v61 }
  0xde   :  { %v374_v11 = vsel %vm259_vm4, %v373_v56, %v369_v8  ;;  %v401_v13 = vsel %vm400_vm8, %v336_v62, %v399_v2 }
  0xdf   :  { %v201_v1 = vpop.xlane.xlu1 %200  ;;  %v383_v14 = vsel %vm245_vm2, %v382_v60, %v378_v5  ;;  %v403_v15 = vsel %vm402_vm9, %v355_v3, %v401_v13 }
  0xe0   :  { %v198_v9 = vpop.xlane.xlu0 %197  ;;  %v392_v10 = vrot.slane %v201_v1, %v785_v7  ;;  %v405_v17 = vsel %vm404_vm10, %v374_v11, %v403_v15 }
  0xe1   :  { %v387_v12 = vrot.slane %v198_v9, %v779_v4  ;;  %v501_v4 = vld [vmem:[%s887_s3] sm:$0xff]  ;;  %s596_s3 = sshll.u32 %s703_s2, 4  ;;  %s597_s3 = int_to_ptr.vmem [resolvable:$true] %s596_s3 }
  0xe2   :  { %628 = vmatpush3.msra.mxu1 %v501_v4  ;;  %s671_s19 = scalar_lea.vmem %s597_s3, 128  ;;  %p676_p9 = scmp.lt.s32.totalorder %s597_s3, %s597_s3 }
  0xe3   :  { %v388_v6 = vsel %vm252_vm3, %v387_v12, %v383_v14  ;;  %p672_p8 = scmp.ne.s32.totalorder %s597_s3, %s671_s19  ;;  %p677_p10 = scmp.lt.s32.totalorder %s671_s19, %s671_s19 }
  0xe4   :  { %v393_v7 = vsel %vm259_vm4, %v392_v10, %v388_v6 }
  0xe5   :  { %v407_v18 = vsel %vm406_vm11, %v393_v7, %v405_v17  ;;  %p678_p11 = por %p677_p10, %p676_p9 }
  0xe6   :  { %v409_v19 = vadd.f32 %v407_v18, %v41_v16 }
  0xe7   :  { %p679_p12 = pnand %p678_p11, %p672_p8 }
  0xe8   :  { %411 = vst.msk [vmem:[#allocation2] sm:$0xff] %vm39_vm0, %v409_v19 }
  0xef   :  { %v415_v20 = vld [vmem:[#allocation2] sm:$0xff] }
  0xf0   :  { %625 = vmatmul.mubr.msk.f32.vlgmr.msra.gmra.mrb[0].mxu0 %vm39_vm0, %v415_v20 }
 0x1c3   :  { %v496_v22 = vpop.f32.mrb[0].mxu0 }
 0x1c4   :  { %v497_v23 = vadd.f32 %v605_v21, %v496_v22  ;;  %v626_v24 = vpop.f32.mrb[1].mxu0 }
 0x1c6   :  { %v500_v25 = vmax.f32 %v497_v23, 0.0 }
 0x1c8   :  { %630 = vmatmul.mubr.msk.f32.vlgmr.msra.gmra.mrb[0].mxu1 %vm509_vm12, %v500_v25 }
 0x29b   :  { %v579_v27 = vpop.f32.mrb[0].mxu1 }
 0x29c   :  { %v580_v28 = vadd.f32 %v607_v26, %v579_v27  ;;  %v631_v29 = vpop.f32.mrb[1].mxu1 }
 0x29e   :  { %v583_v30 = vsub.f32 0.0, %v580_v28 }
 0x2a0   :  { %v584_v31 = vmul.f32 1.442695, %v583_v30 }
 0x2a2   :  { %645 = vpow2.f32 %v584_v31 }
 0x2ac   :  { %v646_v32 = vpop.eup %645 }
 0x2ad   :  { %v586_v33 = vadd.f32 1.0, %v646_v32 }
 0x2af   :  { %647 = vrcp.f32 %v586_v33 }
 0x2b9   :  { %v648_v34 = vpop.eup %647 }
 0x2ba   :  { %589 = vst.msk [vmem:[#allocation6] sm:$0xff] %vm39_vm0, %v648_v34 }
 0x2bb   :  { %682 = shalt.err (!%p679_p12)
}
 0x2bc   :  { %s683_s21 = scalar_lea.hbm %s889_s5, 128 }
 0x2bd   :  { %p684_p13 = scmp.ne.s32.totalorder %s889_s5, %s683_s21  ;;  %p687_p0 = scmp.lt.u32.totalorder %s683_s21, %s889_s5 }
 0x2bf   :  { %p689_p1 = pnand %p687_p0, %p684_p13 }
 0x2c1   :  { %692 = shalt.err (!%p689_p1)
}
 0x2c2   :  { %599 = dma.vmem_to_hbm [thread:$0]  %s597_s3, 128, %s889_s5, [#allocation5]  }
 0x2c3   :  { %695 = dma.done.wait [#allocation5], 128  }
 0x2c4   :  { %696 = vsyncadd [#allocation5], 4294967168 }
 0x2c5   :  { %603 = vsyncpa [#allocation4], 1 }
 0x2c6   :  { %604 = vsyncpa [#allocation5], 1 }

</bundles_post_ra>
